<compile_context>
chip_gen: v7x
topology: tpu7x:2x2x1
jax: 0.10.0
libtpu: 0.0.40
codegen_flags: <defaults>
</compile_context>

<pallas_src>
import jax
import jax.numpy as jnp
from jax import lax
from jax.experimental import pallas as pl
from jax.experimental.pallas import tpu as pltpu

NEG_SLOPE = 0.01   # nn.LeakyReLU default negative_slope
BN_EPS = 1e-5      # nn.BatchNorm2d default eps


def convblock_kernel(x_ref, w1_ref, b1_ref, w2_ref, b2_ref,
                     gamma_ref, beta_ref, srow_ref, fold_ref, foldt_ref,
                     out_ref):
    """Fused ConvBlock forward, fully lane-dense.

    x_ref    : (N*H, W*Cin)         input slab, rows (n,h), lanes (w,ci)
    w1_ref   : (3, W*Cin,  W*Cout)  conv1 banded weights, one per dy tap
    b1_ref   : (1, W*Cout)          conv1 bias, tiled over w
    w2_ref   : (3, W*Cout, W*Cout)  conv2 banded weights
    b2_ref   : (1, W*Cout)          conv2 bias, tiled over w
    gamma_ref: (1, Cout)            domain-selected BN scale (shared by both stages)
    beta_ref : (1, Cout)            domain-selected BN shift
    srow_ref : (3, N*H, N*H)        dy row-shift matrices (zero-pad at h edges)
    fold_ref : (W*Cout, Cout)       0/1 matrix summing the W lane-groups per channel
    foldt_ref: (Cout, W*Cout)       its transpose (per-channel -> per-lane broadcast)
    out_ref  : (N*H, W*Cout)        lane-dense output slab
    """
    NH, WCo = out_ref.shape
    Cout = gamma_ref.shape[1]
    W = WCo // Cout
    inv_m = 1.0 / (NH * W)            # BN reduces over N*H*W elements per channel

    fold = fold_ref[...]
    foldt = foldt_ref[...]
    gamma = gamma_ref[...]
    beta = beta_ref[...]

    def conv_bn_lrelu(slab, w_ref, bias_row):
        # --- 3x3 conv as 3 dense MXU matmuls (one per dy tap) ---------------
        acc = jnp.dot(slab, w_ref[1], preferred_element_type=jnp.float32)  # center tap
        for dy in (0, 2):
            rows = jnp.dot(srow_ref[dy], slab, preferred_element_type=jnp.float32)
            acc = acc + jnp.dot(rows, w_ref[dy], preferred_element_type=jnp.float32)
        y = acc + bias_row                                      # (NH, W*Cout)

        # --- BatchNorm2d (training-mode batch stats) + LeakyReLU ------------
        # per-channel sums: fold the W lane-groups with a small 0/1 matmul
        s1c = jnp.sum(jnp.dot(y, fold, preferred_element_type=jnp.float32),
                      axis=0, keepdims=True)                    # (1, Cout)
        s2c = jnp.sum(jnp.dot(y * y, fold, preferred_element_type=jnp.float32),
                      axis=0, keepdims=True)                    # (1, Cout)
        mean = s1c * inv_m
        var = jnp.maximum(s2c * inv_m - mean * mean, 0.0)       # biased variance
        scale_c = gamma * lax.rsqrt(var + BN_EPS)               # (1, Cout)
        shift_c = beta - mean * scale_c
        # broadcast per-channel scale/shift back to the (1, W*Cout) lane layout
        scale = jnp.dot(scale_c, foldt, preferred_element_type=jnp.float32)
        shift = jnp.dot(shift_c, foldt, preferred_element_type=jnp.float32)
        y = y * scale + shift                                   # dense (NH, 128) VPU work
        return jnp.where(y >= 0, y, NEG_SLOPE * y)              # LeakyReLU

    h = conv_bn_lrelu(x_ref[...], w1_ref, b1_ref[...])
    # TODO(synk): nn.Dropout between the convs is stochastic in training mode;
    # dropout_p == 0.0 here so it is the identity.  p > 0 would need
    # pltpu.prng_seed / prng_random_bits masking at this point.
    out_ref[...] = conv_bn_lrelu(h, w2_ref, b2_ref[...])


# -------------------------- wrapper-side helpers ----------------------------
def _banded_weights(w_hwio, W):
    """(3,3,Ci,Co) HWIO conv kernel -> (3, W*Ci, W*Co) per-dy banded weights.

    wb[dy][w'*Ci+ci, w*Co+co] = w_hwio[dy, dx, ci, co] with dx = w'-w+1 in [0,3);
    blocks outside [0, W) are simply absent, which implements the width zero-pad.
    """
    kh, kw, _, _ = w_hwio.shape
    return jnp.stack([
        sum(jnp.kron(jnp.eye(W, W, k=1 - dx, dtype=jnp.float32),
                     w_hwio[dy, dx].astype(jnp.float32))
            for dx in range(kw))
        for dy in range(kh)
    ])


def _row_shift_mats(N, H):
    """(3, N*H, N*H) matrices: S[dy] @ slab reads row h+dy-1 of the same image
    (zero rows at the height boundaries -> height zero-pad)."""
    return jnp.stack([
        jnp.kron(jnp.eye(N, dtype=jnp.float32),
                 jnp.eye(H, H, k=dy - 1, dtype=jnp.float32))
        for dy in range(3)
    ])


def conv_block_forward(x_nchw, params, domain_label):
    """Pallas equivalent of ConvBlock.forward(x, domain_label)."""
    d = domain_label[0]
    gamma = jnp.take(params["bn_gamma"], d, axis=0)   # domain-specific BN params
    beta = jnp.take(params["bn_beta"], d, axis=0)

    N, Cin, H, W = x_nchw.shape
    Cout = params["w1"].shape[-1]

    # Boundary layout plumbing (tiny): lane-dense input slab (N*H, W*Cin),
    # rows ordered (n, h), lanes ordered (w, ci).
    x_slab = (jnp.transpose(x_nchw, (0, 2, 3, 1))
              .reshape(N * H, W * Cin).astype(jnp.float32))

    w1b = _banded_weights(params["w1"], W)                        # (3, W*Cin,  W*Cout)
    w2b = _banded_weights(params["w2"], W)                        # (3, W*Cout, W*Cout)
    b1t = jnp.tile(params["b1"].astype(jnp.float32), W)[None, :]  # (1, W*Cout)
    b2t = jnp.tile(params["b2"].astype(jnp.float32), W)[None, :]
    srow = _row_shift_mats(N, H)                                  # (3, N*H, N*H)
    fold = jnp.tile(jnp.eye(Cout, dtype=jnp.float32), (W, 1))     # (W*Cout, Cout)
    foldt = fold.T                                                # (Cout, W*Cout)
    gamma = gamma.reshape(1, Cout).astype(jnp.float32)
    beta = beta.reshape(1, Cout).astype(jnp.float32)

    out2d = pl.pallas_call(
        convblock_kernel,
        out_shape=jax.ShapeDtypeStruct((N * H, W * Cout), jnp.float32),
        in_specs=[pl.BlockSpec(memory_space=pltpu.MemorySpace.VMEM)] * 10,
        out_specs=pl.BlockSpec(memory_space=pltpu.MemorySpace.VMEM),
    )(x_slab, w1b, b1t, w2b, b2t, gamma, beta, srow, fold, foldt)

    # (N*H, W*Cout) -> (N, H, W, Cout) is free; the transpose back to NCHW is a
    # tiny boundary op kept only to preserve the PyTorch interface layout.
    return jnp.transpose(out2d.reshape(N, H, W, Cout), (0, 3, 1, 2))


# ------------------------- pure-JAX reference -------------------------------
def _reference(x_nchw, params, domain_label):
    d = domain_label[0]
    gamma = jnp.take(params["bn_gamma"], d, axis=0)
    beta = jnp.take(params["bn_beta"], d, axis=0)

    def conv_bn_lrelu_ref(x, w, b):
        y = lax.conv_general_dilated(
            x, w, window_strides=(1, 1), padding=((1, 1), (1, 1)),
            dimension_numbers=("NHWC", "HWIO", "NHWC"))
        y = y + b[None, None, None, :]
        mean = jnp.mean(y, axis=(0, 1, 2), keepdims=True)
        var = jnp.mean((y - mean) ** 2, axis=(0, 1, 2), keepdims=True)
        y = (y - mean) / jnp.sqrt(var + BN_EPS)
        y = y * gamma[None, None, None, :] + beta[None, None, None, :]
        return jnp.where(y >= 0, y, NEG_SLOPE * y)

    x = jnp.transpose(x_nchw, (0, 2, 3, 1))
    h = conv_bn_lrelu_ref(x, params["w1"], params["b1"])
    h = conv_bn_lrelu_ref(h, params["w2"], params["b2"])
    return jnp.transpose(h, (0, 3, 1, 2))


if __name__ == "__main__":
    # ConvBlock(in_channels=4, out_channels=8, dropout_p=0.0, num_domains=2),
    # input (2, 4, 16, 16), domain_label=[1].
    N, Cin, H, W = 2, 4, 16, 16
    Cout, num_domains = 8, 2

    key = jax.random.PRNGKey(0)
    k_x, k_w1, k_b1, k_w2, k_b2, k_g, k_bb = jax.random.split(key, 7)

    x = jax.random.normal(k_x, (N, Cin, H, W), dtype=jnp.float32)
    domain_label = jnp.array([1], dtype=jnp.int32)

    params = {
        # HWIO conv weights (deterministic synthetic init).
        "w1": 0.1 * jax.random.normal(k_w1, (3, 3, Cin, Cout), dtype=jnp.float32),
        "b1": 0.05 * jax.random.normal(k_b1, (Cout,), dtype=jnp.float32),
        "w2": 0.1 * jax.random.normal(k_w2, (3, 3, Cout, Cout), dtype=jnp.float32),
        "b2": 0.05 * jax.random.normal(k_b2, (Cout,), dtype=jnp.float32),
        # Per-domain BN affine params (non-trivial so the domain selection matters).
        "bn_gamma": 1.0 + 0.1 * jax.random.normal(k_g, (num_domains, Cout), dtype=jnp.float32),
        "bn_beta": 0.05 * jax.random.normal(k_bb, (num_domains, Cout), dtype=jnp.float32),
    }

    out = jax.block_until_ready(conv_block_forward(x, params, domain_label))
    ref = jax.block_until_ready(_reference(x, params, domain_label))

    assert out.shape == (N, Cout, H, W)
    assert jnp.allclose(out, ref, atol=1e-3, rtol=1e-3), float(jnp.max(jnp.abs(out - ref)))

    print("KERNEL_OK")
</pallas_src>

<mosaic_0001>
module attributes {stable_mosaic.version = 11 : i64} {
  func.func @convblock_kernel(%arg0: memref<32x64xf32, #tpu.memory_space<vmem>>, %arg1: memref<3x64x128xf32, #tpu.memory_space<vmem>>, %arg2: memref<1x128xf32, #tpu.memory_space<vmem>>, %arg3: memref<3x128x128xf32, #tpu.memory_space<vmem>>, %arg4: memref<1x128xf32, #tpu.memory_space<vmem>>, %arg5: memref<1x8xf32, #tpu.memory_space<vmem>>, %arg6: memref<1x8xf32, #tpu.memory_space<vmem>>, %arg7: memref<3x32x32xf32, #tpu.memory_space<vmem>>, %arg8: memref<128x8xf32, #tpu.memory_space<vmem>>, %arg9: memref<8x128xf32, #tpu.memory_space<vmem>>, %arg10: memref<32x128xf32, #tpu.memory_space<vmem>>) attributes {dimension_semantics = [], scalar_prefetch = 0 : i64, scratch_operands = 0 : i64, tpu.core_type = #tpu.core_type<tc>} {
    %c0 = arith.constant 0 : index
    %c0_0 = arith.constant 0 : index
    %0 = vector.load %arg8[%c0, %c0_0] : memref<128x8xf32, #tpu.memory_space<vmem>>, vector<128x8xf32>
    %c0_1 = arith.constant 0 : index
    %c0_2 = arith.constant 0 : index
    %1 = vector.load %arg9[%c0_1, %c0_2] : memref<8x128xf32, #tpu.memory_space<vmem>>, vector<8x128xf32>
    %c0_3 = arith.constant 0 : index
    %c0_4 = arith.constant 0 : index
    %2 = vector.load %arg5[%c0_3, %c0_4] : memref<1x8xf32, #tpu.memory_space<vmem>>, vector<1x8xf32>
    %c0_5 = arith.constant 0 : index
    %c0_6 = arith.constant 0 : index
    %3 = vector.load %arg6[%c0_5, %c0_6] : memref<1x8xf32, #tpu.memory_space<vmem>>, vector<1x8xf32>
    %c0_7 = arith.constant 0 : index
    %c0_8 = arith.constant 0 : index
    %4 = vector.load %arg0[%c0_7, %c0_8] : memref<32x64xf32, #tpu.memory_space<vmem>>, vector<32x64xf32>
    %c0_9 = arith.constant 0 : index
    %c0_10 = arith.constant 0 : index
    %5 = vector.load %arg2[%c0_9, %c0_10] : memref<1x128xf32, #tpu.memory_space<vmem>>, vector<1x128xf32>
    %c1 = arith.constant 1 : index
    %c0_11 = arith.constant 0 : index
    %c0_12 = arith.constant 0 : index
    %6 = vector.load %arg1[%c1, %c0_11, %c0_12] : memref<3x64x128xf32, #tpu.memory_space<vmem>>, vector<1x64x128xf32>
    %7 = vector.shape_cast %6 : vector<1x64x128xf32> to vector<64x128xf32>
    %cst = arith.constant dense<0.000000e+00> : vector<32x128xf32>
    %8 = tpu.matmul %4, %7, %cst {dimension_numbers = #tpu.dot_dimension_numbers<[1], [0], [0], [1], [0, 0, 1, 1], [], []>} : vector<32x64xf32>, vector<64x128xf32>, vector<32x128xf32> -> vector<32x128xf32>
    %c0_13 = arith.constant 0 : index
    %c0_14 = arith.constant 0 : index
    %c0_15 = arith.constant 0 : index
    %9 = vector.load %arg7[%c0_13, %c0_14, %c0_15] : memref<3x32x32xf32, #tpu.memory_space<vmem>>, vector<1x32x32xf32>
    %10 = vector.shape_cast %9 : vector<1x32x32xf32> to vector<32x32xf32>
    %cst_16 = arith.constant dense<0.000000e+00> : vector<32x64xf32>
    %11 = tpu.matmul %10, %4, %cst_16 {dimension_numbers = #tpu.dot_dimension_numbers<[1], [0], [0], [1], [0, 0, 1, 1], [], []>} : vector<32x32xf32>, vector<32x64xf32>, vector<32x64xf32> -> vector<32x64xf32>
    %c0_17 = arith.constant 0 : index
    %c0_18 = arith.constant 0 : index
    %c0_19 = arith.constant 0 : index
    %12 = vector.load %arg1[%c0_17, %c0_18, %c0_19] : memref<3x64x128xf32, #tpu.memory_space<vmem>>, vector<1x64x128xf32>
    %13 = vector.shape_cast %12 : vector<1x64x128xf32> to vector<64x128xf32>
    %cst_20 = arith.constant dense<0.000000e+00> : vector<32x128xf32>
    %14 = tpu.matmul %11, %13, %cst_20 {dimension_numbers = #tpu.dot_dimension_numbers<[1], [0], [0], [1], [0, 0, 1, 1], [], []>} : vector<32x64xf32>, vector<64x128xf32>, vector<32x128xf32> -> vector<32x128xf32>
    %15 = arith.addf %8, %14 : vector<32x128xf32>
    %c2 = arith.constant 2 : index
    %c0_21 = arith.constant 0 : index
    %c0_22 = arith.constant 0 : index
    %16 = vector.load %arg7[%c2, %c0_21, %c0_22] : memref<3x32x32xf32, #tpu.memory_space<vmem>>, vector<1x32x32xf32>
    %17 = vector.shape_cast %16 : vector<1x32x32xf32> to vector<32x32xf32>
    %cst_23 = arith.constant dense<0.000000e+00> : vector<32x64xf32>
    %18 = tpu.matmul %17, %4, %cst_23 {dimension_numbers = #tpu.dot_dimension_numbers<[1], [0], [0], [1], [0, 0, 1, 1], [], []>} : vector<32x32xf32>, vector<32x64xf32>, vector<32x64xf32> -> vector<32x64xf32>
    %c2_24 = arith.constant 2 : index
    %c0_25 = arith.constant 0 : index
    %c0_26 = arith.constant 0 : index
    %19 = vector.load %arg1[%c2_24, %c0_25, %c0_26] : memref<3x64x128xf32, #tpu.memory_space<vmem>>, vector<1x64x128xf32>
    %20 = vector.shape_cast %19 : vector<1x64x128xf32> to vector<64x128xf32>
    %cst_27 = arith.constant dense<0.000000e+00> : vector<32x128xf32>
    %21 = tpu.matmul %18, %20, %cst_27 {dimension_numbers = #tpu.dot_dimension_numbers<[1], [0], [0], [1], [0, 0, 1, 1], [], []>} : vector<32x64xf32>, vector<64x128xf32>, vector<32x128xf32> -> vector<32x128xf32>
    %22 = arith.addf %15, %21 : vector<32x128xf32>
    %23 = vector.broadcast %5 : vector<1x128xf32> to vector<32x128xf32>
    %24 = arith.addf %22, %23 : vector<32x128xf32>
    %cst_28 = arith.constant dense<0.000000e+00> : vector<32x8xf32>
    %25 = tpu.matmul %24, %0, %cst_28 {dimension_numbers = #tpu.dot_dimension_numbers<[1], [0], [0], [1], [0, 0, 1, 1], [], []>} : vector<32x128xf32>, vector<128x8xf32>, vector<32x8xf32> -> vector<32x8xf32>
    %cst_29 = arith.constant dense<0.000000e+00> : vector<8xf32>
    %26 = vector.multi_reduction <add>, %25, %cst_29 [0] : vector<32x8xf32> to vector<8xf32>
    %27 = vector.shape_cast %26 : vector<8xf32> to vector<1x8xf32>
    %28 = arith.mulf %24, %24 : vector<32x128xf32>
    %cst_30 = arith.constant dense<0.000000e+00> : vector<32x8xf32>
    %29 = tpu.matmul %28, %0, %cst_30 {dimension_numbers = #tpu.dot_dimension_numbers<[1], [0], [0], [1], [0, 0, 1, 1], [], []>} : vector<32x128xf32>, vector<128x8xf32>, vector<32x8xf32> -> vector<32x8xf32>
    %cst_31 = arith.constant dense<0.000000e+00> : vector<8xf32>
    %30 = vector.multi_reduction <add>, %29, %cst_31 [0] : vector<32x8xf32> to vector<8xf32>
    %31 = vector.shape_cast %30 : vector<8xf32> to vector<1x8xf32>
    %cst_32 = arith.constant 0.001953125 : f32
    %32 = vector.broadcast %cst_32 : f32 to vector<1x8xf32>
    %33 = arith.mulf %27, %32 : vector<1x8xf32>
    %cst_33 = arith.constant 0.001953125 : f32
    %34 = vector.broadcast %cst_33 : f32 to vector<1x8xf32>
    %35 = arith.mulf %31, %34 : vector<1x8xf32>
    %36 = arith.mulf %33, %33 : vector<1x8xf32>
    %37 = arith.subf %35, %36 : vector<1x8xf32>
    %cst_34 = arith.constant 0.000000e+00 : f32
    %38 = vector.broadcast %cst_34 : f32 to vector<1x8xf32>
    %39 = arith.maximumf %37, %38 : vector<1x8xf32>
    %cst_35 = arith.constant 9.99999974E-6 : f32
    %40 = vector.broadcast %cst_35 : f32 to vector<1x8xf32>
    %41 = arith.addf %39, %40 : vector<1x8xf32>
    %42 = math.rsqrt %41 : vector<1x8xf32>
    %43 = arith.mulf %2, %42 : vector<1x8xf32>
    %44 = arith.mulf %33, %43 : vector<1x8xf32>
    %45 = arith.subf %3, %44 : vector<1x8xf32>
    %cst_36 = arith.constant dense<0.000000e+00> : vector<1x128xf32>
    %46 = tpu.matmul %43, %1, %cst_36 {dimension_numbers = #tpu.dot_dimension_numbers<[1], [0], [0], [1], [0, 0, 1, 1], [], []>} : vector<1x8xf32>, vector<8x128xf32>, vector<1x128xf32> -> vector<1x128xf32>
    %cst_37 = arith.constant dense<0.000000e+00> : vector<1x128xf32>
    %47 = tpu.matmul %45, %1, %cst_37 {dimension_numbers = #tpu.dot_dimension_numbers<[1], [0], [0], [1], [0, 0, 1, 1], [], []>} : vector<1x8xf32>, vector<8x128xf32>, vector<1x128xf32> -> vector<1x128xf32>
    %48 = vector.broadcast %46 : vector<1x128xf32> to vector<32x128xf32>
    %49 = arith.mulf %24, %48 : vector<32x128xf32>
    %50 = vector.broadcast %47 : vector<1x128xf32> to vector<32x128xf32>
    %51 = arith.addf %49, %50 : vector<32x128xf32>
    %cst_38 = arith.constant 0.000000e+00 : f32
    %52 = vector.broadcast %cst_38 : f32 to vector<32x128xf32>
    %53 = arith.cmpf oge, %51, %52 : vector<32x128xf32>
    %cst_39 = arith.constant 0.00999999977 : f32
    %54 = vector.broadcast %cst_39 : f32 to vector<32x128xf32>
    %55 = arith.mulf %54, %51 : vector<32x128xf32>
    %56 = arith.select %53, %51, %55 : vector<32x128xi1>, vector<32x128xf32>
    %c0_40 = arith.constant 0 : index
    %c0_41 = arith.constant 0 : index
    %57 = vector.load %arg4[%c0_40, %c0_41] : memref<1x128xf32, #tpu.memory_space<vmem>>, vector<1x128xf32>
    %c1_42 = arith.constant 1 : index
    %c0_43 = arith.constant 0 : index
    %c0_44 = arith.constant 0 : index
    %58 = vector.load %arg3[%c1_42, %c0_43, %c0_44] : memref<3x128x128xf32, #tpu.memory_space<vmem>>, vector<1x128x128xf32>
    %59 = vector.shape_cast %58 : vector<1x128x128xf32> to vector<128x128xf32>
    %cst_45 = arith.constant dense<0.000000e+00> : vector<32x128xf32>
    %60 = tpu.matmul %56, %59, %cst_45 {dimension_numbers = #tpu.dot_dimension_numbers<[1], [0], [0], [1], [0, 0, 1, 1], [], []>} : vector<32x128xf32>, vector<128x128xf32>, vector<32x128xf32> -> vector<32x128xf32>
    %c0_46 = arith.constant 0 : index
    %c0_47 = arith.constant 0 : index
    %c0_48 = arith.constant 0 : index
    %61 = vector.load %arg7[%c0_46, %c0_47, %c0_48] : memref<3x32x32xf32, #tpu.memory_space<vmem>>, vector<1x32x32xf32>
    %62 = vector.shape_cast %61 : vector<1x32x32xf32> to vector<32x32xf32>
    %cst_49 = arith.constant dense<0.000000e+00> : vector<32x128xf32>
    %63 = tpu.matmul %62, %56, %cst_49 {dimension_numbers = #tpu.dot_dimension_numbers<[1], [0], [0], [1], [0, 0, 1, 1], [], []>} : vector<32x32xf32>, vector<32x128xf32>, vector<32x128xf32> -> vector<32x128xf32>
    %c0_50 = arith.constant 0 : index
    %c0_51 = arith.constant 0 : index
    %c0_52 = arith.constant 0 : index
    %64 = vector.load %arg3[%c0_50, %c0_51, %c0_52] : memref<3x128x128xf32, #tpu.memory_space<vmem>>, vector<1x128x128xf32>
    %65 = vector.shape_cast %64 : vector<1x128x128xf32> to vector<128x128xf32>
    %cst_53 = arith.constant dense<0.000000e+00> : vector<32x128xf32>
    %66 = tpu.matmul %63, %65, %cst_53 {dimension_numbers = #tpu.dot_dimension_numbers<[1], [0], [0], [1], [0, 0, 1, 1], [], []>} : vector<32x128xf32>, vector<128x128xf32>, vector<32x128xf32> -> vector<32x128xf32>
    %67 = arith.addf %60, %66 : vector<32x128xf32>
    %c2_54 = arith.constant 2 : index
    %c0_55 = arith.constant 0 : index
    %c0_56 = arith.constant 0 : index
    %68 = vector.load %arg7[%c2_54, %c0_55, %c0_56] : memref<3x32x32xf32, #tpu.memory_space<vmem>>, vector<1x32x32xf32>
    %69 = vector.shape_cast %68 : vector<1x32x32xf32> to vector<32x32xf32>
    %cst_57 = arith.constant dense<0.000000e+00> : vector<32x128xf32>
    %70 = tpu.matmul %69, %56, %cst_57 {dimension_numbers = #tpu.dot_dimension_numbers<[1], [0], [0], [1], [0, 0, 1, 1], [], []>} : vector<32x32xf32>, vector<32x128xf32>, vector<32x128xf32> -> vector<32x128xf32>
    %c2_58 = arith.constant 2 : index
    %c0_59 = arith.constant 0 : index
    %c0_60 = arith.constant 0 : index
    %71 = vector.load %arg3[%c2_58, %c0_59, %c0_60] : memref<3x128x128xf32, #tpu.memory_space<vmem>>, vector<1x128x128xf32>
    %72 = vector.shape_cast %71 : vector<1x128x128xf32> to vector<128x128xf32>
    %cst_61 = arith.constant dense<0.000000e+00> : vector<32x128xf32>
    %73 = tpu.matmul %70, %72, %cst_61 {dimension_numbers = #tpu.dot_dimension_numbers<[1], [0], [0], [1], [0, 0, 1, 1], [], []>} : vector<32x128xf32>, vector<128x128xf32>, vector<32x128xf32> -> vector<32x128xf32>
    %74 = arith.addf %67, %73 : vector<32x128xf32>
    %75 = vector.broadcast %57 : vector<1x128xf32> to vector<32x128xf32>
    %76 = arith.addf %74, %75 : vector<32x128xf32>
    %cst_62 = arith.constant dense<0.000000e+00> : vector<32x8xf32>
    %77 = tpu.matmul %76, %0, %cst_62 {dimension_numbers = #tpu.dot_dimension_numbers<[1], [0], [0], [1], [0, 0, 1, 1], [], []>} : vector<32x128xf32>, vector<128x8xf32>, vector<32x8xf32> -> vector<32x8xf32>
    %cst_63 = arith.constant dense<0.000000e+00> : vector<8xf32>
    %78 = vector.multi_reduction <add>, %77, %cst_63 [0] : vector<32x8xf32> to vector<8xf32>
    %79 = vector.shape_cast %78 : vector<8xf32> to vector<1x8xf32>
    %80 = arith.mulf %76, %76 : vector<32x128xf32>
    %cst_64 = arith.constant dense<0.000000e+00> : vector<32x8xf32>
    %81 = tpu.matmul %80, %0, %cst_64 {dimension_numbers = #tpu.dot_dimension_numbers<[1], [0], [0], [1], [0, 0, 1, 1], [], []>} : vector<32x128xf32>, vector<128x8xf32>, vector<32x8xf32> -> vector<32x8xf32>
    %cst_65 = arith.constant dense<0.000000e+00> : vector<8xf32>
    %82 = vector.multi_reduction <add>, %81, %cst_65 [0] : vector<32x8xf32> to vector<8xf32>
    %83 = vector.shape_cast %82 : vector<8xf32> to vector<1x8xf32>
    %cst_66 = arith.constant 0.001953125 : f32
    %84 = vector.broadcast %cst_66 : f32 to vector<1x8xf32>
    %85 = arith.mulf %79, %84 : vector<1x8xf32>
    %cst_67 = arith.constant 0.001953125 : f32
    %86 = vector.broadcast %cst_67 : f32 to vector<1x8xf32>
    %87 = arith.mulf %83, %86 : vector<1x8xf32>
    %88 = arith.mulf %85, %85 : vector<1x8xf32>
    %89 = arith.subf %87, %88 : vector<1x8xf32>
    %cst_68 = arith.constant 0.000000e+00 : f32
    %90 = vector.broadcast %cst_68 : f32 to vector<1x8xf32>
    %91 = arith.maximumf %89, %90 : vector<1x8xf32>
    %cst_69 = arith.constant 9.99999974E-6 : f32
    %92 = vector.broadcast %cst_69 : f32 to vector<1x8xf32>
    %93 = arith.addf %91, %92 : vector<1x8xf32>
    %94 = math.rsqrt %93 : vector<1x8xf32>
    %95 = arith.mulf %2, %94 : vector<1x8xf32>
    %96 = arith.mulf %85, %95 : vector<1x8xf32>
    %97 = arith.subf %3, %96 : vector<1x8xf32>
    %cst_70 = arith.constant dense<0.000000e+00> : vector<1x128xf32>
    %98 = tpu.matmul %95, %1, %cst_70 {dimension_numbers = #tpu.dot_dimension_numbers<[1], [0], [0], [1], [0, 0, 1, 1], [], []>} : vector<1x8xf32>, vector<8x128xf32>, vector<1x128xf32> -> vector<1x128xf32>
    %cst_71 = arith.constant dense<0.000000e+00> : vector<1x128xf32>
    %99 = tpu.matmul %97, %1, %cst_71 {dimension_numbers = #tpu.dot_dimension_numbers<[1], [0], [0], [1], [0, 0, 1, 1], [], []>} : vector<1x8xf32>, vector<8x128xf32>, vector<1x128xf32> -> vector<1x128xf32>
    %100 = vector.broadcast %98 : vector<1x128xf32> to vector<32x128xf32>
    %101 = arith.mulf %76, %100 : vector<32x128xf32>
    %102 = vector.broadcast %99 : vector<1x128xf32> to vector<32x128xf32>
    %103 = arith.addf %101, %102 : vector<32x128xf32>
    %cst_72 = arith.constant 0.000000e+00 : f32
    %104 = vector.broadcast %cst_72 : f32 to vector<32x128xf32>
    %105 = arith.cmpf oge, %103, %104 : vector<32x128xf32>
    %cst_73 = arith.constant 0.00999999977 : f32
    %106 = vector.broadcast %cst_73 : f32 to vector<32x128xf32>
    %107 = arith.mulf %106, %103 : vector<32x128xf32>
    %108 = arith.select %105, %103, %107 : vector<32x128xi1>, vector<32x128xf32>
    %c0_74 = arith.constant 0 : index
    %c0_75 = arith.constant 0 : index
    %109 = vector.load %arg10[%c0_74, %c0_75] : memref<32x128xf32, #tpu.memory_space<vmem>>, vector<32x128xf32>
    tpu.vector_store %arg10[%c0_74, %c0_75], %108 {strides = array<i32>} : memref<32x128xf32, #tpu.memory_space<vmem>>, vector<32x128xf32>,
    return
  }
}

</mosaic_0001>

<bundles_post_ra>
// kernel: tpu_custom_call.1
= control target key start
LH: loop header
LB: loop body
LE: loop exit
PB: predicated region body
PF: predicated region fallthrough
CT: control target
= control target key end

     0   :  { %15 = vsyncpa [#allocation3], 0  ;;  %s3457_s0 = inlined_call_operand.vmem [shape: f32[32,64], index: 0, kind: input, shape index: {}]   ;;  %s3458_s1 = inlined_call_operand.hbm [shape: f32[3,64,128], index: 1, kind: input, shape index: {}]   ;;  %s3459_s2 = inlined_call_operand.vmem [shape: f32[1,128], index: 2, kind: input, shape index: {}]   ;;  %s3460_s3 = inlined_call_operand.hbm [shape: f32[3,128,128], index: 3, kind: input, shape index: {}]   ;;  %s3461_s4 = inlined_call_operand.vmem [shape: f32[1,128], index: 4, kind: input, shape index: {}]   ;;  %s3462_s5 = inlined_call_operand.vmem [shape: f32[1,8], index: 5, kind: input, shape index: {}]   ;;  %s3463_s6 = inlined_call_operand.vmem [shape: f32[1,8], index: 6, kind: input, shape index: {}]   ;;  %s3464_s7 = inlined_call_operand.vmem [shape: f32[3,32,32], index: 7, kind: input, shape index: {}]   ;;  %s3465_s8 = inlined_call_operand.vmem [shape: f32[128,8], index: 8, kind: input, shape index: {}]   ;;  %s3466_s9 = inlined_call_operand.vmem [shape: f32[8,128], index: 9, kind: input, shape index: {}]   ;;  %s3467_s10 = inlined_call_operand.hbm [shape: f32[32,128], index: 10, kind: output, shape index: {}]  }
   0x1   :  { %16 = vsyncpa [#allocation6], 0 }
   0x2   :  { %17 = vsyncpa [#allocation4], 0  ;;  %s2970_s13 = smov [#allocation2]   ;;  %s2898_s17 = scalar_lea.hbm %s3458_s1, 3072 }
   0x3   :  { %s25_s14 = sshll.u32 %s2970_s13, 4  ;;  %p2899_p0 = scmp.ne.s32.totalorder %s3458_s1, %s2898_s17  ;;  %s26_s14 = int_to_ptr.vmem [resolvable:$true] %s25_s14 }
   0x4   :  { %p2902_p1 = scmp.lt.u32.totalorder %s2898_s17, %s3458_s1 }
   0x6   :  { %p2904_p2 = pnand %p2902_p1, %p2899_p0 }
   0x8   :  { %2907 = shalt.err (!%p2904_p2)
}
   0x9   :  { %s2908_s22 = scalar_lea.vmem %s26_s14, 3072  ;;  %p2913_p4 = scmp.lt.s32.totalorder %s26_s14, %s26_s14 }
   0xa   :  { %p2909_p3 = scmp.ne.s32.totalorder %s26_s14, %s2908_s22  ;;  %p2914_p5 = scmp.lt.s32.totalorder %s2908_s22, %s2908_s22 }
   0xc   :  { %p2915_p6 = por %p2914_p5, %p2913_p4 }
   0xe   :  { %p2916_p7 = pnand %p2915_p6, %p2909_p3 }
  0x10   :  { %2919 = shalt.err (!%p2916_p7)
}
  0x11   :  { %s2971_s23 = smov 128   ;;  %s2972_s24 = smov 8  }
  0x12   :  { %31 = dma.hbm_to_vmem [thread:$0]  %s3458_s1, 3072, %s26_s14, [#allocation3], %s2971_s23, %s2971_s23, %s2972_s24  }
  0x13   :  { %s2973_s27 = smov [#allocation5]   ;;  %s2920_s11 = scalar_lea.hbm %s3460_s3, 6144 }
  0x14   :  { %s39_s28 = sshll.u32 %s2973_s27, 4  ;;  %p2921_p8 = scmp.ne.s32.totalorder %s3460_s3, %s2920_s11  ;;  %s40_s28 = int_to_ptr.vmem [resolvable:$true] %s39_s28 }
  0x15   :  { %p2924_p9 = scmp.lt.u32.totalorder %s2920_s11, %s3460_s3 }
  0x17   :  { %p2926_p10 = pnand %p2924_p9, %p2921_p8 }
  0x19   :  { %2929 = shalt.err (!%p2926_p10)
}
  0x1a   :  { %s2930_s17 = scalar_lea.vmem %s40_s28, 6144  ;;  %p2935_p12 = scmp.lt.s32.totalorder %s40_s28, %s40_s28 }
  0x1b   :  { %p2931_p11 = scmp.ne.s32.totalorder %s40_s28, %s2930_s17  ;;  %p2936_p13 = scmp.lt.s32.totalorder %s2930_s17, %s2930_s17 }
  0x1d   :  { %p2937_p0 = por %p2936_p13, %p2935_p12 }
  0x1f   :  { %p2938_p1 = pnand %p2937_p0, %p2931_p11 }
  0x21   :  { %2941 = shalt.err (!%p2938_p1)
}
  0x22   :  { %45 = dma.hbm_to_vmem [thread:$0]  %s3460_s3, 6144, %s40_s28, [#allocation6], %s2971_s23, %s2971_s23, %s2972_s24  }
  0x23   :  { %2964 = dma.done.wait [#allocation3], 3072  }
  0x24   :  { %2965 = vsyncadd [#allocation3], 4294964224 }
  0x25   :  { %2966 = dma.done.wait [#allocation6], 6144  }
  0x26   :  { %2967 = vsyncadd [#allocation6], 4294961152  ;;  %vm101_vm0 = vcmask 261120   ;;  %v3065_v0 = vld [vmem:[%s3457_s0] sm:$0xff]  ;;  %v3070_v1 = vld [vmem:[%s3457_s0 + $0x8] sm:$0xff]  ;;  %vm207_vm1 = vcmask 523264  }
  0x27   :  { %v3075_v2 = vld [vmem:[%s3457_s0 + $0x10] sm:$0xff]  ;;  %v2567_v3 = vpack.c.bf16 %v3070_v1, %v3065_v0  ;;  %v3082_v4 = vld [vmem:[%s3457_s0 + $0x18] sm:$0xff]  ;;  %v3087_v5 = vld [vmem:[%s3464_s7] sm:$0xff]  ;;  %vm2975_vm2 = vmmov 0   ;;  %vm709_vm3 = vcmask 64512  }
  0x28   :  { %v2571_v6 = vpack.c.bf16 %v3082_v4, %v3075_v2  ;;  %2167 = vmatprep.mubr.msk.f32.mxu0 %vm101_vm0, %v3087_v5  ;;  %v199_v7 = vld [vmem:[#allocation2] sm:$0xff]  ;;  %v200_v8 = vld [vmem:[#allocation2 + $0x8] sm:$0xff]  ;;  %v201_v9 = vld [vmem:[#allocation2 + $0x10] sm:$0xff] }
  0x29   :  { %2568 = vmatprep.subr.bf16.mxu0 %v2567_v3  ;;  %v2575_v10 = vpack.c.bf16 %v200_v8, %v199_v7  ;;  %v202_v11 = vld [vmem:[#allocation2 + $0x18] sm:$0xff]  ;;  %v203_v13 = vld [vmem:[#allocation2 + $0x20] sm:$0xff]  ;;  %v204_v14 = vld [vmem:[#allocation2 + $0x28] sm:$0xff] }
  0x2a   :  { %2570 = vmatpush3.bf16.msra.mxu0 %v2567_v3  ;;  %v2579_v12 = vpack.c.bf16 %v202_v11, %v201_v9  ;;  %v3096_v15 = vld [vmem:[%s3464_s7 + $0x8] sm:$0xff]  ;;  %v3101_v16 = vld [vmem:[%s3464_s7 + $0x10] sm:$0xff]  ;;  %v2583_v17 = vpack.c.bf16 %v204_v14, %v203_v13  ;;  %v206_v19 = vld [vmem:[#allocation2 + $0x38] sm:$0xff] }
  0x2b   :  { %2572 = vmatprep.subr.bf16.mxu0 %v2571_v6  ;;  %2576 = vmatprep.subr.bf16.mxu1 %v2575_v10  ;;  %v205_v18 = vld [vmem:[#allocation2 + $0x30] sm:$0xff]  ;;  %v3110_v20 = vld [vmem:[%s3464_s7 + $0x18] sm:$0xff]  ;;  %v3115_v21 = vld [vmem:[%s3464_s7 + $0x40] sm:$0xff] }
  0x2c   :  { %2578 = vmatpush3.bf16.msra.mxu1 %v2575_v10  ;;  %v2587_v22 = vpack.c.bf16 %v206_v19, %v205_v18  ;;  %v3124_v23 = vld [vmem:[%s3464_s7 + $0x48] sm:$0xff]  ;;  %v3129_v24 = vld [vmem:[%s3464_s7 + $0x50] sm:$0xff]  ;;  %v3138_v25 = vld [vmem:[%s3464_s7 + $0x58] sm:$0xff] }
  0x2d   :  { %2580 = vmatprep.subr.bf16.mxu1 %v2579_v12  ;;  %v89_v26 = vld [vmem:[#allocation2 + $0x40] sm:$0xff]  ;;  %v90_v27 = vld [vmem:[#allocation2 + $0x48] sm:$0xff]  ;;  %v66_v31 = vld [vmem:[%s3465_s8 + $0x10] sm:$0xff] }
  0x2e   :  { %2574 = vmatpush3.bf16.msra.mxu0 %v2571_v6  ;;  %v2591_v28 = vpack.c.bf16 %v90_v27, %v89_v26  ;;  %v64_v29 = vld [vmem:[%s3465_s8] sm:$0xff]  ;;  %v65_v30 = vld [vmem:[%s3465_s8 + $0x8] sm:$0xff]  ;;  %v67_v33 = vld [vmem:[%s3465_s8 + $0x18] sm:$0xff] }
  0x2f   :  { %2608 = vmatprep.subr.bf16.mxu0 %v2567_v3  ;;  %v3151_v32 = vpack.c.bf16 %v65_v30, %v64_v29  ;;  %v3156_v34 = vpack.c.bf16 %v67_v33, %v66_v31  ;;  %v68_v35 = vld [vmem:[%s3465_s8 + $0x20] sm:$0xff]  ;;  %v69_v36 = vld [vmem:[%s3465_s8 + $0x28] sm:$0xff]  ;;  %v70_v38 = vld [vmem:[%s3465_s8 + $0x30] sm:$0xff] }
  0x30   :  { %2582 = vmatpush3.bf16.msra.mxu1 %v2579_v12  ;;  %v3167_v37 = vpack.c.bf16 %v69_v36, %v68_v35  ;;  %v71_v39 = vld [vmem:[%s3465_s8 + $0x38] sm:$0xff]  ;;  %v72_v41 = vld [vmem:[%s3465_s8 + $0x40] sm:$0xff]  ;;  %v73_v42 = vld [vmem:[%s3465_s8 + $0x48] sm:$0xff] }
  0x31   :  { %2168 = vmatmul.mubr.msk.f32.vlgmr.msra.gmra.mrb[0].mxu0 %vm101_vm0, %v3096_v15  ;;  %2584 = vmatprep.subr.bf16.mxu1 %v2583_v17  ;;  %v3177_v40 = vpack.c.bf16 %v71_v39, %v70_v38  ;;  %v3187_v43 = vpack.c.bf16 %v73_v42, %v72_v41  ;;  %v74_v44 = vld [vmem:[%s3465_s8 + $0x50] sm:$0xff]  ;;  %v75_v45 = vld [vmem:[%s3465_s8 + $0x58] sm:$0xff]  ;;  %v76_v47 = vld [vmem:[%s3465_s8 + $0x60] sm:$0xff] }
  0x32   :  { %2170 = vmatprep.mubr.msk.f32.mxu0 %vm101_vm0, %v3101_v16  ;;  %2610 = vmatpush3.bf16.msra.mxu0 %v2567_v3  ;;  %v3197_v46 = vpack.c.bf16 %v75_v45, %v74_v44  ;;  %v77_v48 = vld [vmem:[%s3465_s8 + $0x68] sm:$0xff]  ;;  %v91_v50 = vld [vmem:[#allocation2 + $0x50] sm:$0xff]  ;;  %v92_v51 = vld [vmem:[#allocation2 + $0x58] sm:$0xff]  ;;  %v2974_v45 = vmov 0.0  }
  0x33   :  { %2612 = vmatprep.subr.bf16.mxu0 %v2571_v6  ;;  %v3207_v49 = vpack.c.bf16 %v77_v48, %v76_v47  ;;  %v2595_v54 = vpack.c.bf16 %v92_v51, %v91_v50  ;;  %v93_v55 = vld [vmem:[#allocation2 + $0x60] sm:$0xff]  ;;  %v94_v56 = vld [vmem:[#allocation2 + $0x68] sm:$0xff]  ;;  %v95_v60 = vld [vmem:[#allocation2 + $0x70] sm:$0xff] }
  0x34   :  { %2586 = vmatpush3.bf16.msra.mxu1 %v2583_v17  ;;  %v2599_v58 = vpack.c.bf16 %v94_v56, %v93_v55  ;;  %v96_v61 = vld [vmem:[#allocation2 + $0x78] sm:$0xff]  ;;  %v506_v7 = vld [vmem:[#allocation2 + $0x88] sm:$0xff]  ;;  %v507_v11 = vld [vmem:[#allocation2 + $0x90] sm:$0xff] }
  0x35   :  { %2171 = vmatmul.mubr.msk.f32.gmra.mrb[2].mxu0 %vm101_vm0, %v3110_v20  ;;  %2588 = vmatprep.subr.bf16.mxu1 %v2587_v22  ;;  %v2603_v63 = vpack.c.bf16 %v96_v61, %v95_v60  ;;  %v508_v12 = vld [vmem:[#allocation2 + $0x98] sm:$0xff]  ;;  %v509_v14 = vld [vmem:[#allocation2 + $0xa0] sm:$0xff]  ;;  %v510_v17 = vld [vmem:[#allocation2 + $0xa8] sm:$0xff] }
  0x36   :  { %2614 = vmatpush3.bf16.msra.mxu0 %v2571_v6  ;;  %2225 = vmatprep.mubr.msk.f32.mxu0 %vm101_vm0, %v3115_v21  ;;  %v505_v6 = vld [vmem:[#allocation2 + $0x80] sm:$0xff]  ;;  %v2619_v13 = vpack.c.bf16 %v508_v12, %v507_v11  ;;  %v511_v18 = vld [vmem:[#allocation2 + $0xb0] sm:$0xff]  ;;  %v512_v19 = vld [vmem:[#allocation2 + $0xb8] sm:$0xff] }
  0x37   :  { %2632 = vmatprep.subr.bf16.mxu0 %v3151_v32  ;;  %v2615_v9 = vpack.c.bf16 %v506_v7, %v505_v6  ;;  %v1929_v26 = vld [vmem:[%s3459_s2] ss:$0 sm:$0xff] }
  0x38   :  { %2590 = vmatpush3.bf16.msra.mxu1 %v2587_v22  ;;  %v2627_v22 = vpack.c.bf16 %v512_v19, %v511_v18  ;;  %v3282_v44 = vld [vmem:[%s3466_s9] sm:$0xff] }
  0x39   :  { %2226 = vmatmul.mubr.msk.f32.vlgmr.msra.gmra.mrb[4].mxu0 %vm101_vm0, %v3124_v23  ;;  %2592 = vmatprep.subr.bf16.mxu1 %v2591_v28 }
  0x3a   :  { %2228 = vmatprep.mubr.msk.f32.mxu0 %vm101_vm0, %v3129_v24  ;;  %2634 = vmatpush3.bf16.msra.mxu0 %v3151_v32 }
  0x3b   :  { %2636 = vmatprep.subr.bf16.mxu0 %v3156_v34 }
  0x3d   :  { %2229 = vmatmul.mubr.msk.f32.gmra.mrb[6].mxu0 %vm101_vm0, %v3138_v25 }
  0x3e   :  { %2638 = vmatpush3.bf16.msra.mxu0 %v3156_v34 }
  0x3f   :  { %2640 = vmatprep.subr.bf16.mxu0 %v3167_v37 }
  0x42   :  { %2642 = vmatpush3.bf16.msra.mxu0 %v3167_v37 }
  0x43   :  { %2644 = vmatprep.subr.bf16.mxu0 %v3177_v40 }
  0x46   :  { %2646 = vmatpush3.bf16.msra.mxu0 %v3177_v40 }
  0x47   :  { %2648 = vmatprep.subr.bf16.mxu0 %v3187_v43 }
  0x4a   :  { %2650 = vmatpush3.bf16.msra.mxu0 %v3187_v43 }
  0x4b   :  { %2652 = vmatprep.subr.bf16.mxu0 %v3197_v46 }
  0x4e   :  { %2654 = vmatpush3.bf16.msra.mxu0 %v3197_v46 }
  0x4f   :  { %2656 = vmatprep.subr.bf16.mxu0 %v3207_v49 }
  0x52   :  { %2658 = vmatpush3.bf16.msra.mxu0 %v3207_v49 }
 0x104   :  { %v2169_v52 = vpop.f32.mrb[0].mxu0 }
 0x105   :  { %v180_v53 = vpop.f32.mrb[1].mxu0 }
 0x106   :  { %2189 = vmatprep.mubr.msk.f32.mxu1 %vm207_vm1, %v180_v53 }
 0x107   :  { %2190 = vmatmul.mubr.msk.f32.vlgmr.msra.gmra.mrb[0].mxu1 %vm207_vm1, %v2169_v52 }
 0x108   :  { %2594 = vmatpush3.bf16.msra.mxu1 %v2591_v28  ;;  %v2172_v57 = vpop.f32.mrb[2].mxu0 }
 0x109   :  { %2596 = vmatprep.subr.bf16.mxu1 %v2595_v54  ;;  %v190_v59 = vpop.f32.mrb[3].mxu0 }
 0x10a   :  { %2192 = vmatprep.mubr.msk.f32.mxu1 %vm207_vm1, %v190_v59 }
 0x10b   :  { %2193 = vmatmul.mubr.msk.f32.gmra.mrb[2].mxu1 %vm207_vm1, %v2172_v57 }
 0x10c   :  { %2598 = vmatpush3.bf16.msra.mxu1 %v2595_v54  ;;  %2211 = vmatprep.mubr.msk.f32.mxu1 %vm207_vm1, %v3065_v0  ;;  %v2227_v62 = vpop.f32.mrb[4].mxu0  ;;  %v2623_v0 = vpack.c.bf16 %v510_v17, %v509_v14 }
 0x10d   :  { %2600 = vmatprep.subr.bf16.mxu1 %v2599_v58  ;;  %v485_v3 = vpop.f32.mrb[5].mxu0 }
 0x110   :  { %2602 = vmatpush3.bf16.msra.mxu1 %v2599_v58  ;;  %v2230_v8 = vpop.f32.mrb[6].mxu0 }
 0x111   :  { %2604 = vmatprep.subr.bf16.mxu1 %v2603_v63  ;;  %v495_v10 = vpop.f32.mrb[7].mxu0 }
 0x114   :  { %2606 = vmatpush3.bf16.msra.mxu1 %v2603_v63 }
 0x115   :  { %2616 = vmatprep.subr.bf16.mxu1 %v2615_v9 }
 0x117   :  { %2212 = vmatmul.mubr.msk.f32.vlgmr.msra.gmra.mrb[0].mxu1 %vm207_vm1, %v3070_v1  ;;  %v78_v1 = vld [vmem:[%s3465_s8 + $0x70] sm:$0xff] }
 0x118   :  { %2618 = vmatpush3.bf16.msra.mxu1 %v2615_v9  ;;  %2214 = vmatprep.mubr.msk.f32.mxu1 %vm207_vm1, %v3075_v2  ;;  %v79_v2 = vld [vmem:[%s3465_s8 + $0x78] sm:$0xff] }
 0x119   :  { %2620 = vmatprep.subr.bf16.mxu1 %v2619_v13 }
 0x11b   :  { %2215 = vmatmul.mubr.msk.f32.gmra.mrb[2].mxu1 %vm207_vm1, %v3082_v4  ;;  %v3234_v4 = vpack.c.bf16 %v79_v2, %v78_v1 }
 0x11c   :  { %2622 = vmatpush3.bf16.msra.mxu1 %v2619_v13  ;;  %2247 = vmatprep.mubr.msk.f32.mxu1 %vm207_vm1, %v485_v3 }
 0x11d   :  { %2624 = vmatprep.subr.bf16.mxu1 %v2623_v0  ;;  %2660 = vmatprep.subr.bf16.mxu0 %v3234_v4 }
 0x11e   :  { %2662 = vmatpush3.bf16.msra.mxu0 %v3234_v4 }
 0x11f   :  { %2664 = vmatprep.subr.bf16.mxu0 %v3151_v32 }
 0x120   :  { %2626 = vmatpush3.bf16.msra.mxu1 %v2623_v0 }
 0x121   :  { %2628 = vmatprep.subr.bf16.mxu1 %v2627_v22 }
 0x124   :  { %2630 = vmatpush3.bf16.msra.mxu1 %v2627_v22 }
 0x125   :  { %2329 = vmatprep.subr.mxu1 %v2974_v45 }
 0x127   :  { %2248 = vmatmul.mubr.msk.f32.vlgmr.msra.gmra.mrb[0].mxu1 %vm207_vm1, %v2227_v62 }
 0x128   :  { %2250 = vmatprep.mubr.msk.f32.mxu1 %vm207_vm1, %v495_v10  ;;  %2330 = vmatpush3.msra.mxu1 %v3282_v44 }
 0x129   :  { %2334 = vmatprep.subr.mxu1 %v2974_v45 }
 0x12b   :  { %2251 = vmatmul.mubr.msk.f32.gmra.mrb[2].mxu1 %vm207_vm1, %v2230_v8 }
 0x12c   :  { %2331 = vmatprep.mubr.msk.f32.mxu1 %vm2975_vm2, %v2974_v45 }
 0x1fa   :  { %v2249_v27 = vpop.f32.mrb[0].mxu1 }
 0x1fb   :  { %v591_v28 = vpop.f32.mrb[1].mxu1  ;;  %v3244_v30 = vadd.f32 %v2249_v27, %v1929_v26 }
 0x1fc   :  { %v3242_v29 = vadd.f32 %v1929_v26, %v591_v28 }
 0x1fd   :  { %v724_v39 = vmul.f32 %v3244_v30, %v3244_v30 }
 0x1fe   :  { %v2252_v31 = vpop.f32.mrb[2].mxu1  ;;  %2285 = vmatprep.mubr.f32.mxu0 %v3242_v29  ;;  %v723_v38 = vmul.f32 %v3242_v29, %v3242_v29 }
 0x1ff   :  { %v601_v33 = vpop.f32.mrb[3].mxu1  ;;  %2286 = vmatmul.mubr.f32.vlgmr.msra.gmra.mrb[8].mxu0 %v3244_v30  ;;  %v3251_v36 = vadd.f32 %v2252_v31, %v1929_v26 }
 0x200   :  { %v3248_v35 = vadd.f32 %v1929_v26, %v601_v33  ;;  %2666 = vmatpush3.bf16.msra.mxu0 %v3151_v32 }
 0x201   :  { %2668 = vmatprep.subr.bf16.mxu0 %v3156_v34  ;;  %v726_v42 = vmul.f32 %v3251_v36, %v3251_v36 }
 0x202   :  { %2288 = vmatprep.mubr.f32.mxu0 %v3248_v35  ;;  %v725_v41 = vmul.f32 %v3248_v35, %v3248_v35 }
 0x203   :  { %2289 = vmatmul.mubr.f32.gmra.mrb[10].mxu0 %v3251_v36 }
 0x204   :  { %2670 = vmatpush3.bf16.msra.mxu0 %v3156_v34  ;;  %2323 = vmatprep.mubr.f32.mxu0 %v723_v38 }
 0x205   :  { %2672 = vmatprep.subr.bf16.mxu0 %v3167_v37 }
 0x208   :  { %2674 = vmatpush3.bf16.msra.mxu0 %v3167_v37 }
 0x209   :  { %2676 = vmatprep.subr.bf16.mxu0 %v3177_v40 }
 0x20c   :  { %2678 = vmatpush3.bf16.msra.mxu0 %v3177_v40 }
 0x20d   :  { %2680 = vmatprep.subr.bf16.mxu0 %v3187_v43 }
 0x210   :  { %2682 = vmatpush3.bf16.msra.mxu0 %v3187_v43 }
 0x211   :  { %2684 = vmatprep.subr.bf16.mxu0 %v3197_v46 }
 0x214   :  { %2686 = vmatpush3.bf16.msra.mxu0 %v3197_v46 }
 0x215   :  { %2688 = vmatprep.subr.bf16.mxu0 %v3207_v49 }
 0x218   :  { %2690 = vmatpush3.bf16.msra.mxu0 %v3207_v49 }
 0x219   :  { %2692 = vmatprep.subr.bf16.mxu0 %v3234_v4 }
 0x21c   :  { %2694 = vmatpush3.bf16.msra.mxu0 %v3234_v4 }
 0x21f   :  { %2324 = vmatmul.mubr.f32.vlgmr.msra.gmra.mrb[12].mxu0 %v724_v39  ;;  %v3300_v39 = vld [vmem:[%s3462_s5] sm:$0x1] }
 0x220   :  { %2326 = vmatprep.mubr.f32.mxu0 %v725_v41 }
 0x223   :  { %2327 = vmatmul.mubr.f32.gmra.mrb[14].mxu0 %v726_v42 }
 0x224   :  { %2437 = vmatprep.mubr.msk.f32.mxu0 %vm101_vm0, %v3115_v21 }
 0x2d2   :  { %v2287_v47 = vpop.f32.mrb[8].mxu0 }
 0x2d3   :  { %v711_v21 = vsel %vm709_vm3, %v2287_v47, 0.0  ;;  %v690_v48 = vpop.f32.mrb[9].mxu0  ;;  %v3306_v47 = vld [vmem:[%s3463_s6] sm:$0x1] }
 0x2d4   :  { %v710_v50 = vsel %vm709_vm3, %v690_v48, 0.0 }
 0x2d5   :  { %v712_v51 = vadd.f32 %v711_v21, %v710_v50  ;;  %v981_v50 = vlaneseq }
 0x2d6   :  { %v2290_v52 = vpop.f32.mrb[10].mxu0 }
 0x2d7   :  { %v700_v53 = vpop.f32.mrb[11].mxu0  ;;  %v715_v56 = vsel %vm709_vm3, %v2290_v52, 0.0 }
 0x2d8   :  { %v713_v54 = vsel %vm709_vm3, %v700_v53, 0.0 }
 0x2d9   :  { %v714_v55 = vadd.f32 %v713_v54, %v712_v51  ;;  %v982_v51 = vshrl.u32 %v981_v50, 7  ;;  %v1012_v50 = vld [vmem:[#allocation5 + $0x88] sm:$0xff] }
 0x2db   :  { %v716_v57 = vadd.f32 %v715_v56, %v714_v55  ;;  %v3316_v52 = vsub.s32 0, %v982_v51 }
 0x2dd   :  { %v717_v58 = vrot.slane %v716_v57, 4 }
 0x2df   :  { %v718_v59 = vadd.f32 %v717_v58, %v716_v57 }
 0x2e1   :  { %v719_v3 = vrot.slane %v718_v59, 2 }
 0x2e3   :  { %v720_v10 = vadd.f32 %v719_v3, %v718_v59 }
 0x2e5   :  { %v721_v14 = vrot.slane %v720_v10, 1 }
 0x2e7   :  { %v722_v18 = vadd.f32 %v721_v14, %v720_v10 }
 0x2e9   :  { %v825_v1 = vmul.f32 0.001953125, %v722_v18  ;;  %v1115_v18 = vld [vmem:[#allocation5 + $0x18] sm:$0xff] }
 0x2eb   :  { %v827_v27 = vmul.f32 %v825_v1, %v825_v1 }
 0x2f2   :  { %v2325_v60 = vpop.f32.mrb[12].mxu0 }
 0x2f3   :  { %v813_v61 = vsel %vm709_vm3, %v2325_v60, 0.0  ;;  %v793_v62 = vpop.f32.mrb[13].mxu0 }
 0x2f4   :  { %v812_v63 = vsel %vm709_vm3, %v793_v62, 0.0 }
 0x2f5   :  { %v814_v6 = vadd.f32 %v813_v61, %v812_v63 }
 0x2f6   :  { %v2328_v7 = vpop.f32.mrb[14].mxu0 }
 0x2f7   :  { %v803_v8 = vpop.f32.mrb[15].mxu0  ;;  %v817_v12 = vsel %vm709_vm3, %v2328_v7, 0.0 }
 0x2f8   :  { %v815_v9 = vsel %vm709_vm3, %v803_v8, 0.0 }
 0x2f9   :  { %v816_v11 = vadd.f32 %v815_v9, %v814_v6 }
 0x2fb   :  { %v818_v13 = vadd.f32 %v817_v12, %v816_v11  ;;  %v1112_v12 = vld [vmem:[#allocation5] sm:$0xff] }
 0x2fd   :  { %v819_v17 = vrot.slane %v818_v13, 4 }
 0x2ff   :  { %v820_v0 = vadd.f32 %v819_v17, %v818_v13  ;;  %v1113_v13 = vld [vmem:[#allocation5 + $0x8] sm:$0xff] }
 0x300   :  { %v2703_v17 = vpack.c.bf16 %v1113_v13, %v1112_v12  ;;  %v1021_v13 = vld [vmem:[#allocation5 + $0xd0] sm:$0xff] }
 0x301   :  { %v821_v19 = vrot.slane %v820_v0, 2 }
 0x303   :  { %v822_v22 = vadd.f32 %v821_v19, %v820_v0  ;;  %v1114_v0 = vld [vmem:[#allocation5 + $0x10] sm:$0xff] }
 0x304   :  { %v2707_v19 = vpack.c.bf16 %v1115_v18, %v1114_v0  ;;  %v1023_v0 = vld [vmem:[#allocation5 + $0xe0] sm:$0xff]  ;;  %v1024_v18 = vld [vmem:[#allocation5 + $0xe8] sm:$0xff] }
 0x305   :  { %v823_v2 = vrot.slane %v822_v22, 1 }
 0x307   :  { %v824_v26 = vadd.f32 %v823_v2, %v822_v22  ;;  %v1116_v22 = vld [vmem:[#allocation5 + $0x20] sm:$0xff] }
 0x309   :  { %v826_v28 = vmul.f32 0.001953125, %v824_v26  ;;  %v1121_v26 = vld [vmem:[#allocation5 + $0x48] sm:$0xff] }
 0x30b   :  { %v828_v31 = vsub.f32 %v826_v28, %v827_v27 }
 0x30d   :  { %v829_v33 = vmax.f32 %v828_v31, 0.0  ;;  %v1124_v31 = vld [vmem:[#allocation5 + $0x60] sm:$0xff] }
 0x30f   :  { %v830_v38 = vadd.f32 1e-05, %v829_v33  ;;  %v1125_v33 = vld [vmem:[#allocation5 + $0x68] sm:$0xff] }
 0x311   :  { %2894 = vrsqrt.f32 %v830_v38  ;;  %v2727_v38 = vpack.c.bf16 %v1125_v33, %v1124_v31  ;;  %v1391_v31 = vld [vmem:[#allocation5 + $0x138] sm:$0xff] }
 0x31b   :  { %v2895_v41 = vpop.eup %2894 }
 0x31c   :  { %v832_v42 = vmul.f32 %v2895_v41, %v3300_v39  ;;  %v1126_v41 = vld [vmem:[#allocation5 + $0x70] sm:$0xff] }
 0x31e   :  { %2332 = vmatmul.mubr.msk.f32.vlgmr.msra.gmra.mrb[4].mxu1 %vm709_vm3, %v832_v42  ;;  %v833_v21 = vmul.f32 %v832_v42, %v825_v1  ;;  %v1117_v1 = vld [vmem:[#allocation5 + $0x28] sm:$0xff]  ;;  %v1127_v42 = vld [vmem:[#allocation5 + $0x78] sm:$0xff] }
 0x31f   :  { %2335 = vmatpush3.msra.mxu1 %v3282_v44  ;;  %2336 = vmatprep.mubr.msk.f32.mxu1 %vm2975_vm2, %v2974_v45  ;;  %v2711_v2 = vpack.c.bf16 %v1117_v1, %v1116_v22  ;;  %v1025_v22 = vld [vmem:[#allocation5 + $0xf0] sm:$0xff]  ;;  %v1026_v1 = vld [vmem:[#allocation5 + $0xf8] sm:$0xff] }
 0x320   :  { %v834_v48 = vsub.f32 %v3306_v47, %v833_v21  ;;  %v2731_v21 = vpack.c.bf16 %v1127_v42, %v1126_v41  ;;  %v1393_v41 = vld [vmem:[#allocation5 + $0x148] sm:$0xff] }
 0x322   :  { %2337 = vmatmul.mubr.msk.f32.vlgmr.msra.gmra.mrb[6].mxu1 %vm709_vm3, %v834_v48  ;;  %v1011_v48 = vld [vmem:[#allocation5 + $0x80] sm:$0xff] }
 0x323   :  { %2347 = vmatprep.mubr.msk.f32.mxu1 %vm101_vm0, %v3087_v5  ;;  %v2735_v51 = vpack.c.bf16 %v1012_v50, %v1011_v48  ;;  %v1396_v48 = vld [vmem:[#allocation5 + $0x160] sm:$0xff]  ;;  %v1397_v50 = vld [vmem:[#allocation5 + $0x168] sm:$0xff] }
 0x3f1   :  { %v904_v53 = vpop.f32.mrb[4].mxu1 }
 0x3f2   :  { %v984_v54 = vrot.slane %v904_v53, %v3316_v52  ;;  %v2333_v55 = vpop.f32.mrb[5].mxu1  ;;  %v1013_v53 = vld [vmem:[#allocation5 + $0x90] sm:$0xff] }
 0x3f4   :  { %v985_v56 = vmul.f32 %v984_v54, %v3242_v29  ;;  %v986_v58 = vmul.f32 %v984_v54, %v3244_v30  ;;  %v987_v59 = vmul.f32 %v984_v54, %v3248_v35  ;;  %v988_v60 = vmul.f32 %v984_v54, %v3251_v36  ;;  %v1014_v54 = vld [vmem:[#allocation5 + $0x98] sm:$0xff] }
 0x3f5   :  { %v977_v57 = vpop.f32.mrb[6].mxu1 }
 0x3f6   :  { %v992_v61 = vrot.slane %v977_v57, %v3316_v52  ;;  %v2338_v5 = vpop.f32.mrb[7].mxu1 }
 0x3f8   :  { %v993_v62 = vadd.f32 %v992_v61, %v985_v56  ;;  %v994_v63 = vadd.f32 %v992_v61, %v986_v58  ;;  %v995_v3 = vadd.f32 %v992_v61, %v987_v59  ;;  %v996_v6 = vadd.f32 %v992_v61, %v988_v60  ;;  %v1015_v60 = vld [vmem:[#allocation5 + $0xa0] sm:$0xff]  ;;  %v1016_v61 = vld [vmem:[#allocation5 + $0xa8] sm:$0xff] }
 0x3f9   :  { %v2739_v58 = vpack.c.bf16 %v1014_v54, %v1013_v53  ;;  %v1399_v53 = vld [vmem:[#allocation5 + $0x178] sm:$0xff] }
 0x3fa   :  { %vm997_vm4 = vcmp.ge.f32.partialorder %v993_v62, 0.0  ;;  %vm998_vm5 = vcmp.ge.f32.partialorder %v994_v63, 0.0  ;;  %v1001_v7 = vmul.f32 0.01, %v993_v62  ;;  %v1002_v8 = vmul.f32 0.01, %v994_v63 }
 0x3fb   :  { %vm999_vm6 = vcmp.ge.f32.partialorder %v995_v3, 0.0  ;;  %vm1000_vm7 = vcmp.ge.f32.partialorder %v996_v6, 0.0  ;;  %v1003_v29 = vmul.f32 0.01, %v995_v3  ;;  %v1004_v9 = vmul.f32 0.01, %v996_v6 }
 0x3fc   :  { %v3324_v30 = vsel %vm997_vm4, %v993_v62, %v1001_v7  ;;  %v3326_v35 = vsel %vm998_vm5, %v994_v63, %v1002_v8  ;;  %v1017_v7 = vld [vmem:[#allocation5 + $0xb0] sm:$0xff]  ;;  %v1018_v8 = vld [vmem:[#allocation5 + $0xb8] sm:$0xff] }
 0x3fd   :  { %v2695_v36 = vpack.c.bf16 %v3326_v35, %v3324_v30  ;;  %v3330_v10 = vsel %vm999_vm6, %v995_v3, %v1003_v29  ;;  %v3332_v11 = vsel %vm1000_vm7, %v996_v6, %v1004_v9  ;;  %v2743_v3 = vpack.c.bf16 %v1016_v61, %v1015_v60  ;;  %v1019_v9 = vld [vmem:[#allocation5 + $0xc0] sm:$0xff] }
 0x3fe   :  { %v2699_v14 = vpack.c.bf16 %v3332_v11, %v3330_v10  ;;  %v2747_v29 = vpack.c.bf16 %v1018_v8, %v1017_v7 }
 0x3ff   :  { %2696 = vmatprep.subr.bf16.mxu1 %v2695_v36  ;;  %2768 = vmatprep.subr.bf16.mxu0 %v2695_v36 }
 0x400   :  { %2698 = vmatpush3.bf16.msra.mxu1 %v2695_v36  ;;  %2770 = vmatpush3.bf16.msra.mxu0 %v2695_v36  ;;  %v1020_v36 = vld [vmem:[#allocation5 + $0xc8] sm:$0xff] }
 0x401   :  { %2700 = vmatprep.subr.bf16.mxu1 %v2699_v14  ;;  %2772 = vmatprep.subr.bf16.mxu0 %v2699_v14  ;;  %v2751_v12 = vpack.c.bf16 %v1020_v36, %v1019_v9 }
 0x404   :  { %2702 = vmatpush3.bf16.msra.mxu1 %v2699_v14  ;;  %2774 = vmatpush3.bf16.msra.mxu0 %v2699_v14  ;;  %v1022_v14 = vld [vmem:[#allocation5 + $0xd8] sm:$0xff] }
 0x405   :  { %2704 = vmatprep.subr.bf16.mxu1 %v2703_v17  ;;  %2808 = vmatprep.subr.bf16.mxu0 %v3151_v32 }
 0x407   :  { %2348 = vmatmul.mubr.msk.f32.vlgmr.msra.gmra.mrb[8].mxu1 %vm101_vm0, %v3096_v15  ;;  %2438 = vmatmul.mubr.msk.f32.vlgmr.msra.gmra.mrb[16].mxu0 %vm101_vm0, %v3124_v23  ;;  %v1118_v15 = vld [vmem:[#allocation5 + $0x30] sm:$0xff]  ;;  %v1119_v23 = vld [vmem:[#allocation5 + $0x38] sm:$0xff] }
 0x408   :  { %2350 = vmatprep.mubr.msk.f32.mxu1 %vm101_vm0, %v3101_v16  ;;  %2440 = vmatprep.mubr.msk.f32.mxu0 %vm101_vm0, %v3129_v24  ;;  %v2715_v16 = vpack.c.bf16 %v1119_v23, %v1118_v15  ;;  %v1120_v24 = vld [vmem:[#allocation5 + $0x40] sm:$0xff]  ;;  %v1385_v15 = vld [vmem:[#allocation5 + $0x108] sm:$0xff] }
 0x409   :  { %2706 = vmatpush3.bf16.msra.mxu1 %v2703_v17  ;;  %2810 = vmatpush3.bf16.msra.mxu0 %v3151_v32  ;;  %v2719_v27 = vpack.c.bf16 %v1121_v26, %v1120_v24  ;;  %v2755_v17 = vpack.c.bf16 %v1022_v14, %v1021_v13  ;;  %v1387_v24 = vld [vmem:[#allocation5 + $0x118] sm:$0xff] }
 0x40a   :  { %2708 = vmatprep.subr.bf16.mxu1 %v2707_v19  ;;  %2812 = vmatprep.subr.bf16.mxu0 %v3156_v34 }
 0x40b   :  { %2351 = vmatmul.mubr.msk.f32.gmra.mrb[10].mxu1 %vm101_vm0, %v3110_v20  ;;  %2441 = vmatmul.mubr.msk.f32.gmra.mrb[18].mxu0 %vm101_vm0, %v3138_v25  ;;  %v1122_v20 = vld [vmem:[#allocation5 + $0x50] sm:$0xff]  ;;  %v1123_v25 = vld [vmem:[#allocation5 + $0x58] sm:$0xff] }
 0x40c   :  { %v2723_v28 = vpack.c.bf16 %v1123_v25, %v1122_v20  ;;  %v1389_v20 = vld [vmem:[#allocation5 + $0x128] sm:$0xff] }
 0x40d   :  { %2710 = vmatpush3.bf16.msra.mxu1 %v2707_v19  ;;  %2814 = vmatpush3.bf16.msra.mxu0 %v3156_v34  ;;  %v2759_v19 = vpack.c.bf16 %v1024_v18, %v1023_v0 }
 0x40e   :  { %2712 = vmatprep.subr.bf16.mxu1 %v2711_v2  ;;  %2816 = vmatprep.subr.bf16.mxu0 %v3167_v37 }
 0x411   :  { %2714 = vmatpush3.bf16.msra.mxu1 %v2711_v2  ;;  %2818 = vmatpush3.bf16.msra.mxu0 %v3167_v37  ;;  %v1384_v2 = vld [vmem:[#allocation5 + $0x100] sm:$0xff] }
 0x412   :  { %2716 = vmatprep.subr.bf16.mxu1 %v2715_v16  ;;  %2820 = vmatprep.subr.bf16.mxu0 %v3177_v40  ;;  %v2775_v23 = vpack.c.bf16 %v1385_v15, %v1384_v2 }
 0x415   :  { %2718 = vmatpush3.bf16.msra.mxu1 %v2715_v16  ;;  %2822 = vmatpush3.bf16.msra.mxu0 %v3177_v40  ;;  %v1386_v16 = vld [vmem:[#allocation5 + $0x110] sm:$0xff] }
 0x416   :  { %2720 = vmatprep.subr.bf16.mxu1 %v2719_v27  ;;  %2824 = vmatprep.subr.bf16.mxu0 %v3187_v43  ;;  %v2779_v26 = vpack.c.bf16 %v1387_v24, %v1386_v16 }
 0x419   :  { %2722 = vmatpush3.bf16.msra.mxu1 %v2719_v27  ;;  %2826 = vmatpush3.bf16.msra.mxu0 %v3187_v43  ;;  %v1388_v27 = vld [vmem:[#allocation5 + $0x120] sm:$0xff] }
 0x41a   :  { %2724 = vmatprep.subr.bf16.mxu1 %v2723_v28  ;;  %2828 = vmatprep.subr.bf16.mxu0 %v3197_v46  ;;  %v2783_v25 = vpack.c.bf16 %v1389_v20, %v1388_v27 }
 0x41d   :  { %2726 = vmatpush3.bf16.msra.mxu1 %v2723_v28  ;;  %2830 = vmatpush3.bf16.msra.mxu0 %v3197_v46  ;;  %v1390_v28 = vld [vmem:[#allocation5 + $0x130] sm:$0xff] }
 0x41e   :  { %2728 = vmatprep.subr.bf16.mxu1 %v2727_v38  ;;  %2832 = vmatprep.subr.bf16.mxu0 %v3207_v49  ;;  %v2787_v33 = vpack.c.bf16 %v1391_v31, %v1390_v28 }
 0x421   :  { %2730 = vmatpush3.bf16.msra.mxu1 %v2727_v38  ;;  %2834 = vmatpush3.bf16.msra.mxu0 %v3207_v49  ;;  %v1392_v38 = vld [vmem:[#allocation5 + $0x140] sm:$0xff] }
 0x422   :  { %2732 = vmatprep.subr.bf16.mxu1 %v2731_v21  ;;  %2836 = vmatprep.subr.bf16.mxu0 %v3234_v4  ;;  %v2791_v42 = vpack.c.bf16 %v1393_v41, %v1392_v38 }
 0x425   :  { %2734 = vmatpush3.bf16.msra.mxu1 %v2731_v21  ;;  %2838 = vmatpush3.bf16.msra.mxu0 %v3234_v4  ;;  %v1394_v21 = vld [vmem:[#allocation5 + $0x150] sm:$0xff] }
 0x426   :  { %2840 = vmatprep.subr.bf16.mxu0 %v3151_v32  ;;  %2736 = vmatprep.subr.bf16.mxu1 %v2735_v51 }
 0x4da   :  { %v2349_v55 = vpop.f32.mrb[8].mxu1  ;;  %v3365_v56 = vpop.f32.mrb[16].mxu0 }
 0x4db   :  { %v1093_v57 = vpop.f32.mrb[9].mxu1  ;;  %v1364_v59 = vpop.f32.mrb[17].mxu0 }
 0x4dc   :  { %2385 = vmatprep.mubr.f32.mxu1 %v1093_v57 }
 0x4dd   :  { %2386 = vmatmul.mubr.f32.vlgmr.msra.gmra.mrb[12].mxu1 %v2349_v55  ;;  %v1940_v55 = vld [vmem:[%s3461_s4] ss:$0 sm:$0xff]  ;;  %s2976_s4 = smov [#allocation7]  }
 0x4de   :  { %2738 = vmatpush3.bf16.msra.mxu1 %v2735_v51  ;;  %v2352_v5 = vpop.f32.mrb[10].mxu1  ;;  %v3367_v62 = vpop.f32.mrb[18].mxu0  ;;  %v2799_v51 = vpack.c.bf16 %v1397_v50, %v1396_v48  ;;  %s1892_s16 = sshll.u32 %s2976_s4, 4  ;;  %s1893_s16 = int_to_ptr.vmem [resolvable:$true] %s1892_s16 }
 0x4df   :  { %v1103_v63 = vpop.f32.mrb[11].mxu1  ;;  %2740 = vmatprep.subr.bf16.mxu1 %v2739_v58  ;;  %v3369_v6 = vpop.f32.mrb[19].mxu0  ;;  %s2942_s17 = scalar_lea.vmem %s1893_s16, 512  ;;  %p2947_p3 = scmp.lt.s32.totalorder %s1893_s16, %s1893_s16 }
 0x4e0   :  { %2388 = vmatprep.mubr.f32.mxu1 %v1103_v63  ;;  %p2943_p2 = scmp.ne.s32.totalorder %s1893_s16, %s2942_s17  ;;  %p2948_p4 = scmp.lt.s32.totalorder %s2942_s17, %s2942_s17 }
 0x4e1   :  { %2389 = vmatmul.mubr.f32.gmra.mrb[14].mxu1 %v2352_v5 }
 0x4e2   :  { %2742 = vmatpush3.bf16.msra.mxu1 %v2739_v58  ;;  %2423 = vmatprep.mubr.f32.mxu1 %v3324_v30  ;;  %v2763_v30 = vpack.c.bf16 %v1026_v1, %v1025_v22  ;;  %p2949_p5 = por %p2948_p4, %p2947_p3 }
 0x4e3   :  { %2744 = vmatprep.subr.bf16.mxu1 %v2743_v3 }
 0x4e4   :  { %p2950_p6 = pnand %p2949_p5, %p2943_p2 }
 0x4e6   :  { %2746 = vmatpush3.bf16.msra.mxu1 %v2743_v3 }
 0x4e7   :  { %2748 = vmatprep.subr.bf16.mxu1 %v2747_v29 }
 0x4ea   :  { %2750 = vmatpush3.bf16.msra.mxu1 %v2747_v29 }
 0x4eb   :  { %2752 = vmatprep.subr.bf16.mxu1 %v2751_v12 }
 0x4ee   :  { %2754 = vmatpush3.bf16.msra.mxu1 %v2751_v12 }
 0x4ef   :  { %2756 = vmatprep.subr.bf16.mxu1 %v2755_v17 }
 0x4f2   :  { %2758 = vmatpush3.bf16.msra.mxu1 %v2755_v17 }
 0x4f3   :  { %2760 = vmatprep.subr.bf16.mxu1 %v2759_v19 }
 0x4f6   :  { %2762 = vmatpush3.bf16.msra.mxu1 %v2759_v19 }
 0x4f7   :  { %2764 = vmatprep.subr.bf16.mxu1 %v2763_v30 }
 0x4fa   :  { %2766 = vmatpush3.bf16.msra.mxu1 %v2763_v30 }
 0x4fb   :  { %2776 = vmatprep.subr.bf16.mxu1 %v2775_v23 }
 0x4fd   :  { %2424 = vmatmul.mubr.f32.vlgmr.msra.gmra.mrb[12].mxu1 %v3326_v35  ;;  %v1395_v35 = vld [vmem:[#allocation5 + $0x158] sm:$0xff] }
 0x4fe   :  { %2426 = vmatprep.mubr.f32.mxu1 %v3330_v10  ;;  %2778 = vmatpush3.bf16.msra.mxu1 %v2775_v23  ;;  %v2795_v10 = vpack.c.bf16 %v1395_v35, %v1394_v21 }
 0x4ff   :  { %2780 = vmatprep.subr.bf16.mxu1 %v2779_v26 }
 0x501   :  { %2427 = vmatmul.mubr.f32.gmra.mrb[14].mxu1 %v3332_v11  ;;  %v1398_v11 = vld [vmem:[#allocation5 + $0x170] sm:$0xff] }
 0x502   :  { %2782 = vmatpush3.bf16.msra.mxu1 %v2779_v26  ;;  %2475 = vmatprep.mubr.f32.mxu1 %v1364_v59  ;;  %v2803_v54 = vpack.c.bf16 %v1399_v53, %v1398_v11 }
 0x503   :  { %2784 = vmatprep.subr.bf16.mxu1 %v2783_v25 }
 0x506   :  { %2786 = vmatpush3.bf16.msra.mxu1 %v2783_v25 }
 0x507   :  { %2788 = vmatprep.subr.bf16.mxu1 %v2787_v33 }
 0x50a   :  { %2790 = vmatpush3.bf16.msra.mxu1 %v2787_v33 }
 0x50b   :  { %2792 = vmatprep.subr.bf16.mxu1 %v2791_v42 }
 0x50e   :  { %2794 = vmatpush3.bf16.msra.mxu1 %v2791_v42 }
 0x50f   :  { %2796 = vmatprep.subr.bf16.mxu1 %v2795_v10 }
 0x512   :  { %2798 = vmatpush3.bf16.msra.mxu1 %v2795_v10 }
 0x513   :  { %2800 = vmatprep.subr.bf16.mxu1 %v2799_v51 }
 0x516   :  { %2802 = vmatpush3.bf16.msra.mxu1 %v2799_v51 }
 0x517   :  { %2804 = vmatprep.subr.bf16.mxu1 %v2803_v54 }
 0x51a   :  { %2806 = vmatpush3.bf16.msra.mxu1 %v2803_v54 }
 0x51d   :  { %2476 = vmatmul.mubr.f32.vlgmr.msra.gmra.mrb[12].mxu1 %v3365_v56 }
 0x51e   :  { %2478 = vmatprep.mubr.f32.mxu1 %v3369_v6 }
 0x521   :  { %2479 = vmatmul.mubr.f32.gmra.mrb[14].mxu1 %v3367_v62 }
 0x5f0   :  { %v2477_v57 = vpop.f32.mrb[12].mxu1 }
 0x5f1   :  { %v1466_v58 = vpop.f32.mrb[13].mxu1  ;;  %v3383_v60 = vadd.f32 %v2477_v57, %v1940_v55 }
 0x5f2   :  { %v3381_v59 = vadd.f32 %v1940_v55, %v1466_v58 }
 0x5f4   :  { %v2480_v61 = vpop.f32.mrb[14].mxu1  ;;  %2513 = vmatprep.mubr.f32.mxu0 %v3381_v59  ;;  %v1597_v63 = vmul.f32 %v3381_v59, %v3381_v59 }
 0x5f5   :  { %v1476_v5 = vpop.f32.mrb[15].mxu1  ;;  %2514 = vmatmul.mubr.f32.vlgmr.msra.gmra.mrb[20].mxu0 %v3383_v60  ;;  %v3390_v62 = vadd.f32 %v2480_v61, %v1940_v55 }
 0x5f6   :  { %v3387_v56 = vadd.f32 %v1940_v55, %v1476_v5  ;;  %2842 = vmatpush3.bf16.msra.mxu0 %v3151_v32  ;;  %v1598_v32 = vmul.f32 %v3383_v60, %v3383_v60 }
 0x5f7   :  { %2844 = vmatprep.subr.bf16.mxu0 %v3156_v34 }
 0x5f8   :  { %2516 = vmatprep.mubr.f32.mxu0 %v3387_v56 }
 0x5f9   :  { %2517 = vmatmul.mubr.f32.gmra.mrb[22].mxu0 %v3390_v62 }
 0x5fa   :  { %2846 = vmatpush3.bf16.msra.mxu0 %v3156_v34  ;;  %2551 = vmatprep.mubr.f32.mxu0 %v1597_v63  ;;  %v1599_v34 = vmul.f32 %v3387_v56, %v3387_v56 }
 0x5fb   :  { %2848 = vmatprep.subr.bf16.mxu0 %v3167_v37 }
 0x5fe   :  { %2850 = vmatpush3.bf16.msra.mxu0 %v3167_v37  ;;  %v1600_v37 = vmul.f32 %v3390_v62, %v3390_v62 }
 0x5ff   :  { %2852 = vmatprep.subr.bf16.mxu0 %v3177_v40 }
 0x602   :  { %2854 = vmatpush3.bf16.msra.mxu0 %v3177_v40 }
 0x603   :  { %2856 = vmatprep.subr.bf16.mxu0 %v3187_v43 }
 0x606   :  { %2858 = vmatpush3.bf16.msra.mxu0 %v3187_v43 }
 0x607   :  { %2860 = vmatprep.subr.bf16.mxu0 %v3197_v46 }
 0x60a   :  { %2862 = vmatpush3.bf16.msra.mxu0 %v3197_v46 }
 0x60b   :  { %2864 = vmatprep.subr.bf16.mxu0 %v3207_v49 }
 0x60e   :  { %2866 = vmatpush3.bf16.msra.mxu0 %v3207_v49 }
 0x60f   :  { %2868 = vmatprep.subr.bf16.mxu0 %v3234_v4 }
 0x612   :  { %2870 = vmatpush3.bf16.msra.mxu0 %v3234_v4 }
 0x613   :  { %2557 = vmatprep.subr.mxu0 %v2974_v45 }
 0x615   :  { %2552 = vmatmul.mubr.f32.vlgmr.msra.gmra.mrb[24].mxu0 %v1598_v32 }
 0x616   :  { %2554 = vmatprep.mubr.f32.mxu0 %v1599_v34  ;;  %2558 = vmatpush3.msra.mxu0 %v3282_v44 }
 0x617   :  { %2562 = vmatprep.subr.mxu0 %v2974_v45 }
 0x619   :  { %2555 = vmatmul.mubr.f32.gmra.mrb[26].mxu0 %v1600_v37 }
 0x61a   :  { %2559 = vmatprep.mubr.msk.f32.mxu0 %vm2975_vm2, %v2974_v45 }
 0x6c8   :  { %v2515_v40 = vpop.f32.mrb[20].mxu0 }
 0x6c9   :  { %v1585_v43 = vsel %vm709_vm3, %v2515_v40, 0.0  ;;  %v1565_v46 = vpop.f32.mrb[21].mxu0 }
 0x6ca   :  { %v1584_v49 = vsel %vm709_vm3, %v1565_v46, 0.0 }
 0x6cb   :  { %v1586_v4 = vadd.f32 %v1585_v43, %v1584_v49 }
 0x6cc   :  { %v2518_v3 = vpop.f32.mrb[22].mxu0 }
 0x6cd   :  { %v1575_v6 = vpop.f32.mrb[23].mxu0  ;;  %v1589_v29 = vsel %vm709_vm3, %v2518_v3, 0.0 }
 0x6ce   :  { %v1587_v7 = vsel %vm709_vm3, %v1575_v6, 0.0 }
 0x6cf   :  { %v1588_v8 = vadd.f32 %v1587_v7, %v1586_v4 }
 0x6d1   :  { %v1590_v9 = vadd.f32 %v1589_v29, %v1588_v8 }
 0x6d3   :  { %v1591_v36 = vrot.slane %v1590_v9, 4 }
 0x6d5   :  { %v1592_v12 = vadd.f32 %v1591_v36, %v1590_v9 }
 0x6d7   :  { %v1593_v18 = vrot.slane %v1592_v12, 2 }
 0x6d9   :  { %v1594_v2 = vadd.f32 %v1593_v18, %v1592_v12 }
 0x6db   :  { %v1595_v24 = vrot.slane %v1594_v2, 1 }
 0x6dd   :  { %v1596_v20 = vadd.f32 %v1595_v24, %v1594_v2 }
 0x6df   :  { %v1699_v31 = vmul.f32 0.001953125, %v1596_v20 }
 0x6e1   :  { %v1701_v41 = vmul.f32 %v1699_v31, %v1699_v31 }
 0x6e8   :  { %v2553_v13 = vpop.f32.mrb[24].mxu0 }
 0x6e9   :  { %v1687_v14 = vsel %vm709_vm3, %v2553_v13, 0.0  ;;  %v1667_v17 = vpop.f32.mrb[25].mxu0 }
 0x6ea   :  { %v1686_v0 = vsel %vm709_vm3, %v1667_v17, 0.0 }
 0x6eb   :  { %v1688_v19 = vadd.f32 %v1687_v14, %v1686_v0 }
 0x6ec   :  { %v2556_v22 = vpop.f32.mrb[26].mxu0 }
 0x6ed   :  { %v1677_v1 = vpop.f32.mrb[27].mxu0  ;;  %v1691_v23 = vsel %vm709_vm3, %v2556_v22, 0.0 }
 0x6ee   :  { %v1689_v30 = vsel %vm709_vm3, %v1677_v1, 0.0 }
 0x6ef   :  { %v1690_v15 = vadd.f32 %v1689_v30, %v1688_v19 }
 0x6f1   :  { %v1692_v16 = vadd.f32 %v1691_v23, %v1690_v15 }
 0x6f3   :  { %v1693_v26 = vrot.slane %v1692_v16, 4 }
 0x6f5   :  { %v1694_v27 = vadd.f32 %v1693_v26, %v1692_v16 }
 0x6f7   :  { %v1695_v25 = vrot.slane %v1694_v27, 2 }
 0x6f9   :  { %v1696_v28 = vadd.f32 %v1695_v25, %v1694_v27 }
 0x6fb   :  { %v1697_v33 = vrot.slane %v1696_v28, 1 }
 0x6fd   :  { %v1698_v38 = vadd.f32 %v1697_v33, %v1696_v28 }
 0x6ff   :  { %v1700_v42 = vmul.f32 0.001953125, %v1698_v38 }
 0x701   :  { %v1702_v21 = vsub.f32 %v1700_v42, %v1701_v41 }
 0x703   :  { %v1703_v35 = vmax.f32 %v1702_v21, 0.0 }
 0x705   :  { %v1704_v10 = vadd.f32 1e-05, %v1703_v35 }
 0x707   :  { %2896 = vrsqrt.f32 %v1704_v10 }
 0x711   :  { %v2897_v48 = vpop.eup %2896 }
 0x712   :  { %v1706_v50 = vmul.f32 %v2897_v48, %v3300_v39 }
 0x714   :  { %2560 = vmatmul.mubr.msk.f32.vlgmr.msra.gmra.mrb[28].mxu0 %vm709_vm3, %v1706_v50  ;;  %v1707_v51 = vmul.f32 %v1706_v50, %v1699_v31 }
 0x715   :  { %2563 = vmatpush3.msra.mxu0 %v3282_v44  ;;  %2564 = vmatprep.mubr.msk.f32.mxu0 %vm2975_vm2, %v2974_v45 }
 0x716   :  { %v1708_v11 = vsub.f32 %v3306_v47, %v1707_v51 }
 0x718   :  { %2565 = vmatmul.mubr.msk.f32.vlgmr.msra.gmra.mrb[30].mxu0 %vm709_vm3, %v1708_v11 }
 0x7e7   :  { %v1778_v53 = vpop.f32.mrb[28].mxu0 }
 0x7e8   :  { %v1858_v54 = vrot.slane %v1778_v53, %v3316_v52  ;;  %v2561_v55 = vpop.f32.mrb[29].mxu0 }
 0x7ea   :  { %v1859_v57 = vmul.f32 %v1858_v54, %v3381_v59  ;;  %v1860_v39 = vmul.f32 %v1858_v54, %v3383_v60  ;;  %v1861_v61 = vmul.f32 %v1858_v54, %v3387_v56  ;;  %v1862_v44 = vmul.f32 %v1858_v54, %v3390_v62 }
 0x7eb   :  { %v1851_v58 = vpop.f32.mrb[30].mxu0 }
 0x7ec   :  { %v1866_v5 = vrot.slane %v1851_v58, %v3316_v52  ;;  %v2566_v45 = vpop.f32.mrb[31].mxu0 }
 0x7ee   :  { %v1867_v63 = vadd.f32 %v1866_v5, %v1859_v57  ;;  %v1868_v47 = vadd.f32 %v1866_v5, %v1860_v39  ;;  %v1869_v32 = vadd.f32 %v1866_v5, %v1861_v61  ;;  %v1870_v34 = vadd.f32 %v1866_v5, %v1862_v44 }
 0x7f0   :  { %v1875_v37 = vmul.f32 0.01, %v1867_v63  ;;  %v1876_v40 = vmul.f32 0.01, %v1868_v47  ;;  %v1877_v43 = vmul.f32 0.01, %v1869_v32 }
 0x7f1   :  { %v1878_v59 = vmul.f32 0.01, %v1870_v34  ;;  %vm1871_vm8 = vcmp.ge.f32.partialorder %v1867_v63, 0.0  ;;  %vm1872_vm9 = vcmp.ge.f32.partialorder %v1868_v47, 0.0  ;;  %vm1873_vm10 = vcmp.ge.f32.partialorder %v1869_v32, 0.0 }
 0x7f2   :  { %vm1874_vm11 = vcmp.ge.f32.partialorder %v1870_v34, 0.0  ;;  %v1879_v60 = vsel %vm1871_vm8, %v1867_v63, %v1875_v37  ;;  %v1880_v56 = vsel %vm1872_vm9, %v1868_v47, %v1876_v40  ;;  %v1881_v62 = vsel %vm1873_vm10, %v1869_v32, %v1877_v43 }
 0x7f3   :  { %v1882_v52 = vsel %vm1874_vm11, %v1870_v34, %v1878_v59  ;;  %1883 = vst [vmem:[#allocation7] sm:$0xff] %v1879_v60  ;;  %1884 = vst [vmem:[#allocation7 + $0x8] sm:$0xff] %v1880_v56 }
 0x7f4   :  { %1885 = vst [vmem:[#allocation7 + $0x10] sm:$0xff] %v1881_v62  ;;  %1886 = vst [vmem:[#allocation7 + $0x18] sm:$0xff] %v1882_v52 }
 0x7f5   :  { %2953 = shalt.err (!%p2950_p6)
}
 0x7f6   :  { %s2954_s18 = scalar_lea.hbm %s3467_s10, 512 }
 0x7f7   :  { %p2955_p7 = scmp.ne.s32.totalorder %s3467_s10, %s2954_s18  ;;  %p2958_p8 = scmp.lt.u32.totalorder %s2954_s18, %s3467_s10 }
 0x7f9   :  { %p2960_p9 = pnand %p2958_p8, %p2955_p7 }
 0x7fb   :  { %2963 = shalt.err (!%p2960_p9)
}
 0x7fc   :  { %1898 = dma.vmem_to_hbm [thread:$0]  %s1893_s16, 512, %s3467_s10, [#allocation4], %s2971_s23, %s2971_s23, %s2972_s24  }
 0x7fd   :  { %2968 = dma.done.wait [#allocation4], 512  }
 0x7fe   :  { %2969 = vsyncadd [#allocation4], 4294966784 }
 0x7ff   :  { %1902 = vsyncpa [#allocation3], 1 }
 0x800   :  { %1903 = vsyncpa [#allocation6], 1 }
 0x801   :  { %1904 = vsyncpa [#allocation4], 1 }

</bundles_post_ra>
